<compile_context>
chip_gen: v6e
topology: v6e:2x2x1
jax: 0.10.0
libtpu: 0.0.40
codegen_flags: <defaults>
</compile_context>

<pallas_src>
import jax
import jax.numpy as jnp
from jax.experimental import pallas as pl
from jax.experimental.pallas import tpu as pltpu

F32 = jnp.float32
WDTYPE = jnp.bfloat16      # weight storage dtype (MXU-friendly); activations stay f32
LANE = 128


def _round_up(n, m=LANE):
    return ((n + m - 1) // m) * m


def _elu(x):
    # ELU, alpha=1.0 (PyTorch default).
    return jnp.where(x > 0, x, jnp.exp(jnp.minimum(x, 0.0)) - 1.0)


def _full_spec(a):
    """Whole-array block, constant index_map (fetched once, resident in VMEM)."""
    return pl.BlockSpec(a.shape, lambda *_: (0,) * a.ndim)


# ----------------------------------------------------------------------------
# Shared in-kernel math (weights/biases passed as Refs, activations as values).
# ----------------------------------------------------------------------------
def _lstm_cell(x, h, c, wih_ref, whh_ref, b_ref):
    """One LSTM cell. x:(1,K_in) h:(1,H) unpadded-K; c:(1,hp) lane-padded.
    Gate blocks are lane-padded to hp each (PyTorch order i,f,g,o)."""
    hp = b_ref.shape[1] // 4
    wdt = wih_ref.dtype
    gates = (jnp.dot(x.astype(wdt), wih_ref[...], preferred_element_type=jnp.float32)
             + jnp.dot(h.astype(wdt), whh_ref[...], preferred_element_type=jnp.float32)
             + b_ref[...])
    i = jax.nn.sigmoid(gates[:, 0 * hp:1 * hp])
    f = jax.nn.sigmoid(gates[:, 1 * hp:2 * hp])
    g = jnp.tanh(gates[:, 2 * hp:3 * hp])
    o = jax.nn.sigmoid(gates[:, 3 * hp:4 * hp])
    c_new = f * c + i * g                 # padded lanes stay exactly 0
    h_new = o * jnp.tanh(c_new)
    return h_new, c_new


def _recurrent_step(x, st, wih0, whh0, b0, wih1, whh1, b1,
                    aw0, ab0, aw1, ab1, aw2, ab2):
    """2-layer LSTM step + 3-layer actor MLP. st:(>=4,hp) rows [h0,h1,c0,c1,...]."""
    H = whh0.shape[0]                     # true hidden size (unpadded K)
    hid0 = aw1.shape[0]
    hid1 = aw2.shape[0]
    wdt = aw0.dtype

    h0, h1 = st[0:1, :H], st[1:2, :H]     # unpadded-K views for the recurrent dots
    c0, c1 = st[2:3, :], st[3:4, :]       # full lane-padded rows for elementwise

    h0n, c0n = _lstm_cell(x, h0, c0, wih0, whh0, b0)
    h1n, c1n = _lstm_cell(h0n[:, :H], h1, c1, wih1, whh1, b1)

    a = _elu(jnp.dot(h1n[:, :H].astype(wdt), aw0[...],
                     preferred_element_type=jnp.float32) + ab0[...])
    a = _elu(jnp.dot(a[:, :hid0].astype(wdt), aw1[...],
                     preferred_element_type=jnp.float32) + ab1[...])
    y = jnp.dot(a[:, :hid1].astype(wdt), aw2[...],
                preferred_element_type=jnp.float32) + ab2[...]

    st_new = jnp.concatenate([h0n, h1n, c0n, c1n], axis=0)   # (4, hp)
    return y, st_new


def _pack_state(st_new, rows, hp):
    pad_rows = rows - 4
    if pad_rows:
        st_new = jnp.concatenate([st_new, jnp.zeros((pad_rows, hp), F32)], axis=0)
    return st_new


# ----------------------------------------------------------------------------
# Kernel 1: non-recurrent actor MLP, batch-parallel grid.
# ----------------------------------------------------------------------------
def _actor_kernel(x_ref, w0_ref, b0_ref, w1_ref, b1_ref, w2_ref, b2_ref, out_ref):
    wdt = w0_ref.dtype
    hid0 = w1_ref.shape[0]
    hid1 = w2_ref.shape[0]
    x = x_ref[...]
    h = _elu(jnp.dot(x.astype(wdt), w0_ref[...],
                     preferred_element_type=jnp.float32) + b0_ref[...])
    h = _elu(jnp.dot(h[:, :hid0].astype(wdt), w1_ref[...],
                     preferred_element_type=jnp.float32) + b1_ref[...])
    y = jnp.dot(h[:, :hid1].astype(wdt), w2_ref[...],
                preferred_element_type=jnp.float32) + b2_ref[...]
    out_ref[...] = y.astype(out_ref.dtype)


def _choose_tile_b(batch):
    if batch <= 8:
        return batch                      # single full block (equal to full dim)
    # >=2 grid steps (so v7x can shard across both TCs), rows multiple of 8,
    # capped at 512 to amortize per-step overhead on v5e/v6e.
    return min(512, _round_up(-(-batch // 2), 8))


def policy_forward(x, ff_params):
    """Non-recurrent path: actor(normalizer(x)); normalizer is Identity.
    Returns lane-padded actions (batch, act_p); slice [:, :act_dim] lazily."""
    fw0, fb0, fw1, fb1, fw2, fb2 = ff_params
    batch, obs = x.shape
    act_p = fw2.shape[1]

    tile_b = _choose_tile_b(batch)
    grid = (pl.cdiv(batch, tile_b),)

    return pl.pallas_call(
        _actor_kernel,
        out_shape=jax.ShapeDtypeStruct((batch, act_p), F32),
        grid=grid,
        in_specs=[
            pl.BlockSpec((tile_b, obs), lambda i: (i, 0)),
            _full_spec(fw0), _full_spec(fb0), _full_spec(fw1),
            _full_spec(fb1), _full_spec(fw2), _full_spec(fb2),
        ],
        out_specs=pl.BlockSpec((tile_b, act_p), lambda i: (i, 0)),
        compiler_params=pltpu.CompilerParams(dimension_semantics=("parallel",)),
    )(x, fw0, fb0, fw1, fb1, fw2, fb2)


# ----------------------------------------------------------------------------
# Kernel 2: single fused recurrent step (2-layer LSTM, seq=1, batch=1) + actor.
# ----------------------------------------------------------------------------
def _policy_lstm_actor_kernel(x_ref, wih0, whh0, b0, wih1, whh1, b1,
                              aw0, ab0, aw1, ab1, aw2, ab2, state_ref,
                              act_ref, state_out_ref):
    x = x_ref[...]
    st = state_ref[...]
    y, st_new = _recurrent_step(x, st, wih0, whh0, b0, wih1, whh1, b1,
                                aw0, ab0, aw1, ab1, aw2, ab2)
    act_ref[...] = y.astype(act_ref.dtype)
    rows, hp = state_out_ref.shape
    state_out_ref[...] = _pack_state(st_new, rows, hp)   # one full-tile store


def policy_forward_lstm(x, state, rec_params):
    """Recurrent path: one fused pallas_call; returns (padded action, new state).
    NOTE: `state` is donated via input_output_aliases — do not reuse the old array."""
    act_p = rec_params[-2].shape[1]
    vmem = pl.BlockSpec(memory_space=pltpu.MemorySpace.VMEM)
    action, state_new = pl.pallas_call(
        _policy_lstm_actor_kernel,
        out_shape=(
            jax.ShapeDtypeStruct((1, act_p), F32),
            jax.ShapeDtypeStruct(state.shape, F32),
        ),
        in_specs=[vmem] * 14,
        out_specs=(vmem, vmem),
        input_output_aliases={13: 1},     # carried state aliases in-place
    )(x, *rec_params, state)
    return action, state_new


# ----------------------------------------------------------------------------
# Kernel 3: T fused steps inside one pallas_call (grid over time, weights resident,
# state carried in VMEM scratch). Biggest real-world lever for rollouts/eval export.
# ----------------------------------------------------------------------------
def _policy_lstm_rollout_kernel(xs_ref, wih0, whh0, b0, wih1, whh1, b1,
                                aw0, ab0, aw1, ab1, aw2, ab2, state_in_ref,
                                act_ref, state_out_ref, st_scratch):
    t = pl.program_id(0)

    @pl.when(t == 0)
    def _():
        st_scratch[...] = state_in_ref[...]

    x = xs_ref[0]                          # (1, obs)
    st = st_scratch[...]
    y, st_new = _recurrent_step(x, st, wih0, whh0, b0, wih1, whh1, b1,
                                aw0, ab0, aw1, ab1, aw2, ab2)
    act_ref[0] = y.astype(act_ref.dtype)

    rows, hp = st_scratch.shape
    packed = _pack_state(st_new, rows, hp)
    st_scratch[...] = packed
    state_out_ref[...] = packed


def policy_rollout_lstm(xs, state, rec_params):
    """Run T recurrent steps in ONE pallas_call. xs: (T, obs).
    Returns (padded actions (T, act_p), final state)."""
    T, obs = xs.shape
    act_p = rec_params[-2].shape[1]
    xs3 = xs.reshape(T, 1, obs)

    in_specs = ([pl.BlockSpec((1, 1, obs), lambda t: (t, 0, 0))]
                + [_full_spec(a) for a in rec_params]
                + [_full_spec(state)])

    actions, state_new = pl.pallas_call(
        _policy_lstm_rollout_kernel,
        out_shape=(
            jax.ShapeDtypeStruct((T, 1, act_p), F32),
            jax.ShapeDtypeStruct(state.shape, F32),
        ),
        grid=(T,),
        in_specs=in_specs,
        out_specs=(
            pl.BlockSpec((1, 1, act_p), lambda t: (t, 0, 0)),
            pl.BlockSpec(state.shape, lambda t: (0, 0)),
        ),
        scratch_shapes=[pltpu.VMEM(state.shape, F32)],
        compiler_params=pltpu.CompilerParams(dimension_semantics=("arbitrary",)),
    )(xs3, *rec_params, state)
    return actions.reshape(T, act_p), state_new


# ----------------------------------------------------------------------------
# Parameter preparation (wrapper-side, done once).
# Only output (N) axes are padded to 128 lanes; K dims keep their true sizes.
# ----------------------------------------------------------------------------
def _embed(a, shape):
    return jnp.zeros(shape, F32).at[:a.shape[0], :a.shape[1]].set(a.astype(F32))


def _pad_gate_cols(w, H, hp):
    """(rows, 4H) -> (rows, 4hp); gate k's real columns land at [k*hp : k*hp+H]."""
    out = jnp.zeros((w.shape[0], 4 * hp), F32)
    for k in range(4):
        out = out.at[:, k * hp:k * hp + H].set(w[:, k * H:(k + 1) * H].astype(F32))
    return out


def prepare_recurrent_params(lstm_params, actor_params, hidden_size,
                             weight_dtype=WDTYPE):
    (wih0, whh0, b0), (wih1, whh1, b1) = lstm_params
    H = hidden_size
    hp = _round_up(H)

    def prep_layer(wih, whh, b):
        return (_pad_gate_cols(wih, H, hp).astype(weight_dtype),
                _pad_gate_cols(whh, H, hp).astype(weight_dtype),
                _pad_gate_cols(b, H, hp))                 # bias stays f32

    wih0p, whh0p, b0p = prep_layer(wih0, whh0, b0)
    wih1p, whh1p, b1p = prep_layer(wih1, whh1, b1)

    (aw0, ab0), (aw1, ab1), (aw2, ab2) = actor_params
    hid0, hid1 = aw0.shape[1], aw1.shape[1]
    hid0_p, hid1_p = _round_up(hid0), _round_up(hid1)
    act_p = _round_up(aw2.shape[1])
    aw0p = _embed(aw0, (H, hid0_p)).astype(weight_dtype);    ab0p = _embed(ab0, (1, hid0_p))
    aw1p = _embed(aw1, (hid0, hid1_p)).astype(weight_dtype); ab1p = _embed(ab1, (1, hid1_p))
    aw2p = _embed(aw2, (hid1, act_p)).astype(weight_dtype);  ab2p = _embed(ab2, (1, act_p))
    return (wih0p, whh0p, b0p, wih1p, whh1p, b1p,
            aw0p, ab0p, aw1p, ab1p, aw2p, ab2p)


def prepare_ff_actor_params(actor_params, weight_dtype=WDTYPE):
    (w0, b0), (w1, b1), (w2, b2) = actor_params
    obs, hid0 = w0.shape
    hid1 = w1.shape[1]
    hid0_p, hid1_p, act_p = _round_up(hid0), _round_up(hid1), _round_up(w2.shape[1])
    fw0 = _embed(w0, (obs, hid0_p)).astype(weight_dtype);  fb0 = _embed(b0, (1, hid0_p))
    fw1 = _embed(w1, (hid0, hid1_p)).astype(weight_dtype); fb1 = _embed(b1, (1, hid1_p))
    fw2 = _embed(w2, (hid1, act_p)).astype(weight_dtype);  fb2 = _embed(b2, (1, act_p))
    return (fw0, fb0, fw1, fb1, fw2, fb2)


def reset_memory(num_layers, hidden_size):
    """Packed, padded state: rows [0:L]=h, [L:2L]=c, padded to 8 rows x 128 lanes."""
    rows = _round_up(2 * num_layers, 8)
    return jnp.zeros((rows, _round_up(hidden_size)), F32)


def unpack_state(state, num_layers, hidden_size):
    """Back to the PyTorch (L, 1, H) buffer layout."""
    h = state[:num_layers, :hidden_size].reshape(num_layers, 1, hidden_size)
    c = state[num_layers:2 * num_layers, :hidden_size].reshape(num_layers, 1, hidden_size)
    return h, c


# ----------------------------------------------------------------------------
# Pure-JAX reference (unpadded, f32) for correctness checks.
# ----------------------------------------------------------------------------
def _actor_ref(x, actor_params):
    (w0, b0), (w1, b1), (w2, b2) = actor_params
    h = _elu(x @ w0 + b0)
    h = _elu(h @ w1 + b1)
    return h @ w2 + b2


def _lstm_cell_ref(x, h, c, wih, whh, b, H):
    g = x @ wih + h @ whh + b
    i = jax.nn.sigmoid(g[:, 0:H]); f = jax.nn.sigmoid(g[:, H:2 * H])
    gg = jnp.tanh(g[:, 2 * H:3 * H]); o = jax.nn.sigmoid(g[:, 3 * H:4 * H])
    c2 = f * c + i * gg
    return o * jnp.tanh(c2), c2


def _policy_lstm_ref(x, h, c, lstm_params, actor_params, H):
    (wih0, whh0, b0), (wih1, whh1, b1) = lstm_params
    h0, c0 = _lstm_cell_ref(x, h[0], c[0], wih0, whh0, b0, H)
    h1, c1 = _lstm_cell_ref(h0, h[1], c[1], wih1, whh1, b1, H)
    act = _actor_ref(h1, actor_params)
    return act, jnp.stack([h0, h1]), jnp.stack([c0, c1])


# ----------------------------------------------------------------------------
# Deterministic synthetic parameters (shapes follow the torch module's __init__;
# weight matrices stored pre-transposed to (in_features, out_features)).
# ----------------------------------------------------------------------------
def _make_linear(key, fan_in, fan_out, scale=0.1):
    kw, kb = jax.random.split(key)
    w = scale * jax.random.normal(kw, (fan_in, fan_out), F32)
    b = scale * jax.random.normal(kb, (1, fan_out), F32)
    return w, b


def _make_lstm_layer(key, in_size, hidden_size, scale=0.1):
    k1, k2, k3, k4 = jax.random.split(key, 4)
    wih = scale * jax.random.normal(k1, (in_size, 4 * hidden_size), F32)
    whh = scale * jax.random.normal(k2, (hidden_size, 4 * hidden_size), F32)
    b_ih = scale * jax.random.normal(k3, (1, 4 * hidden_size), F32)
    b_hh = scale * jax.random.normal(k4, (1, 4 * hidden_size), F32)
    return wih, whh, b_ih + b_hh     # combined bias (PyTorch adds both)


if __name__ == "__main__":
    key = jax.random.PRNGKey(0)
    keys = jax.random.split(key, 12)

    obs_dim = 32
    lstm_hidden = 32
    lstm_layers = 2
    actor_hidden = (64, 64)
    action_dim = 8
    batch = 2
    T = 4

    # --- non-recurrent exporter: actor on raw (Identity-normalized) observations ---
    actor_params_ff = (
        _make_linear(keys[0], obs_dim, actor_hidden[0]),
        _make_linear(keys[1], actor_hidden[0], actor_hidden[1]),
        _make_linear(keys[2], actor_hidden[1], action_dim),
    )
    ff_params = prepare_ff_actor_params(actor_params_ff)
    x_ff = jax.random.normal(keys[3], (batch, obs_dim), F32)
    actions_ff = policy_forward(x_ff, ff_params)[:, :action_dim]
    actions_ff_ref = _actor_ref(x_ff, actor_params_ff)

    # --- recurrent exporter: fused LSTM step + actor, aliased packed state ---
    lstm_params = (
        _make_lstm_layer(keys[4], obs_dim, lstm_hidden),
        _make_lstm_layer(keys[5], lstm_hidden, lstm_hidden),
    )
    actor_params_rnn = (
        _make_linear(keys[6], lstm_hidden, actor_hidden[0]),
        _make_linear(keys[7], actor_hidden[0], actor_hidden[1]),
        _make_linear(keys[8], actor_hidden[1], action_dim),
    )
    rec_params = prepare_recurrent_params(lstm_params, actor_params_rnn, lstm_hidden)
    state = reset_memory(lstm_layers, lstm_hidden)
    x_rnn = jax.random.normal(keys[9], (1, obs_dim), F32)

    a1, state = policy_forward_lstm(x_rnn, state, rec_params)
    a2, state = policy_forward_lstm(x_rnn, state, rec_params)

    # reference (torch-layout state)
    h_ref = jnp.zeros((lstm_layers, 1, lstm_hidden), F32)
    c_ref = jnp.zeros_like(h_ref)
    a1_ref, h_ref, c_ref = _policy_lstm_ref(x_rnn, h_ref, c_ref, lstm_params,
                                            actor_params_rnn, lstm_hidden)
    a2_ref, h_ref, c_ref = _policy_lstm_ref(x_rnn, h_ref, c_ref, lstm_params,
                                            actor_params_rnn, lstm_hidden)

    # --- rollout: T fused steps inside one pallas_call ---
    xs = jax.random.normal(keys[10], (T, obs_dim), F32)
    roll_state0 = reset_memory(lstm_layers, lstm_hidden)
    roll_acts, roll_state = policy_rollout_lstm(xs, roll_state0, rec_params)

    hr = jnp.zeros((lstm_layers, 1, lstm_hidden), F32)
    cr = jnp.zeros_like(hr)
    roll_acts_ref = []
    for t in range(T):
        at, hr, cr = _policy_lstm_ref(xs[t:t + 1], hr, cr, lstm_params,
                                      actor_params_rnn, lstm_hidden)
        roll_acts_ref.append(at)
    roll_acts_ref = jnp.concatenate(roll_acts_ref, axis=0)

    jax.block_until_ready((actions_ff, a1, a2, state, roll_acts, roll_state))

    atol, rtol = 2e-2, 2e-2
    assert actions_ff.shape == (batch, action_dim)
    assert a1.shape == (1, _round_up(action_dim))
    assert state.shape == (_round_up(2 * lstm_layers, 8), _round_up(lstm_hidden))
    assert jnp.allclose(actions_ff, actions_ff_ref, atol=atol, rtol=rtol)
    assert jnp.allclose(a1[:, :action_dim], a1_ref, atol=atol, rtol=rtol)
    assert jnp.allclose(a2[:, :action_dim], a2_ref, atol=atol, rtol=rtol)
    h_unp, c_unp = unpack_state(state, lstm_layers, lstm_hidden)
    assert jnp.allclose(h_unp, h_ref, atol=atol, rtol=rtol)
    assert jnp.allclose(c_unp, c_ref, atol=atol, rtol=rtol)

    assert roll_acts.shape == (T, _round_up(action_dim))
    assert jnp.allclose(roll_acts[:, :action_dim], roll_acts_ref, atol=atol, rtol=rtol)
    hr_unp, cr_unp = unpack_state(roll_state, lstm_layers, lstm_hidden)
    assert jnp.allclose(hr_unp, hr, atol=atol, rtol=rtol)
    assert jnp.allclose(cr_unp, cr, atol=atol, rtol=rtol)

    print("KERNEL_OK")
</pallas_src>

<mosaic_0001>
module attributes {stable_mosaic.version = 11 : i64} {
  func.func @_actor_kernel(%arg0: i32, %arg1: memref<2x32xf32, #tpu.memory_space<vmem>>, %arg2: memref<32x128xbf16, #tpu.memory_space<vmem>>, %arg3: memref<1x128xf32, #tpu.memory_space<vmem>>, %arg4: memref<64x128xbf16, #tpu.memory_space<vmem>>, %arg5: memref<1x128xf32, #tpu.memory_space<vmem>>, %arg6: memref<64x128xbf16, #tpu.memory_space<vmem>>, %arg7: memref<1x128xf32, #tpu.memory_space<vmem>>, %arg8: memref<2x128xf32, #tpu.memory_space<vmem>>) attributes {dimension_semantics = [#tpu.dimension_semantics<parallel>], iteration_bounds = array<i64: 1>, scalar_prefetch = 0 : i64, scratch_operands = 0 : i64, tpu.core_type = #tpu.core_type<tc>, window_params = [{transform_indices = @transform_0, window_bounds = array<i64: 2, 32>}, {pipeline_mode = #tpu.pipeline_mode<synchronous>, transform_indices = @transform_1, window_bounds = array<i64: 32, 128>}, {pipeline_mode = #tpu.pipeline_mode<synchronous>, transform_indices = @transform_2, window_bounds = array<i64: 1, 128>}, {pipeline_mode = #tpu.pipeline_mode<synchronous>, transform_indices = @transform_3, window_bounds = array<i64: 64, 128>}, {pipeline_mode = #tpu.pipeline_mode<synchronous>, transform_indices = @transform_4, window_bounds = array<i64: 1, 128>}, {pipeline_mode = #tpu.pipeline_mode<synchronous>, transform_indices = @transform_5, window_bounds = array<i64: 64, 128>}, {pipeline_mode = #tpu.pipeline_mode<synchronous>, transform_indices = @transform_6, window_bounds = array<i64: 1, 128>}, {transform_indices = @transform_7, window_bounds = array<i64: 2, 128>}]} {
    %c0 = arith.constant 0 : index
    %c0_0 = arith.constant 0 : index
    %0 = vector.load %arg1[%c0, %c0_0] : memref<2x32xf32, #tpu.memory_space<vmem>>, vector<2x32xf32>
    %1 = arith.truncf %0 : vector<2x32xf32> to vector<2x32xbf16>
    %c0_1 = arith.constant 0 : index
    %c0_2 = arith.constant 0 : index
    %2 = vector.load %arg2[%c0_1, %c0_2] : memref<32x128xbf16, #tpu.memory_space<vmem>>, vector<32x128xbf16>
    %cst = arith.constant dense<0.000000e+00> : vector<2x128xf32>
    %3 = tpu.matmul %1, %2, %cst {dimension_numbers = #tpu.dot_dimension_numbers<[1], [0], [0], [1], [0, 0, 1, 1], [], []>} : vector<2x32xbf16>, vector<32x128xbf16>, vector<2x128xf32> -> vector<2x128xf32>
    %c0_3 = arith.constant 0 : index
    %c0_4 = arith.constant 0 : index
    %4 = vector.load %arg3[%c0_3, %c0_4] : memref<1x128xf32, #tpu.memory_space<vmem>>, vector<1x128xf32>
    %5 = vector.broadcast %4 : vector<1x128xf32> to vector<2x128xf32>
    %6 = arith.addf %3, %5 : vector<2x128xf32>
    %cst_5 = arith.constant 0.000000e+00 : f32
    %7 = vector.broadcast %cst_5 : f32 to vector<2x128xf32>
    %8 = arith.cmpf ogt, %6, %7 : vector<2x128xf32>
    %cst_6 = arith.constant 0.000000e+00 : f32
    %9 = vector.broadcast %cst_6 : f32 to vector<2x128xf32>
    %10 = arith.minimumf %6, %9 : vector<2x128xf32>
    %11 = math.exp %10 : vector<2x128xf32>
    %cst_7 = arith.constant 1.000000e+00 : f32
    %12 = vector.broadcast %cst_7 : f32 to vector<2x128xf32>
    %13 = arith.subf %11, %12 : vector<2x128xf32>
    %14 = arith.select %8, %6, %13 : vector<2x128xi1>, vector<2x128xf32>
    %15 = vector.extract_strided_slice %14 {offsets = [0, 0], sizes = [2, 64], strides = [1, 1]} : vector<2x128xf32> to vector<2x64xf32>
    %16 = arith.truncf %15 : vector<2x64xf32> to vector<2x64xbf16>
    %c0_8 = arith.constant 0 : index
    %c0_9 = arith.constant 0 : index
    %17 = vector.load %arg4[%c0_8, %c0_9] : memref<64x128xbf16, #tpu.memory_space<vmem>>, vector<64x128xbf16>
    %cst_10 = arith.constant dense<0.000000e+00> : vector<2x128xf32>
    %18 = tpu.matmul %16, %17, %cst_10 {dimension_numbers = #tpu.dot_dimension_numbers<[1], [0], [0], [1], [0, 0, 1, 1], [], []>} : vector<2x64xbf16>, vector<64x128xbf16>, vector<2x128xf32> -> vector<2x128xf32>
    %c0_11 = arith.constant 0 : index
    %c0_12 = arith.constant 0 : index
    %19 = vector.load %arg5[%c0_11, %c0_12] : memref<1x128xf32, #tpu.memory_space<vmem>>, vector<1x128xf32>
    %20 = vector.broadcast %19 : vector<1x128xf32> to vector<2x128xf32>
    %21 = arith.addf %18, %20 : vector<2x128xf32>
    %cst_13 = arith.constant 0.000000e+00 : f32
    %22 = vector.broadcast %cst_13 : f32 to vector<2x128xf32>
    %23 = arith.cmpf ogt, %21, %22 : vector<2x128xf32>
    %cst_14 = arith.constant 0.000000e+00 : f32
    %24 = vector.broadcast %cst_14 : f32 to vector<2x128xf32>
    %25 = arith.minimumf %21, %24 : vector<2x128xf32>
    %26 = math.exp %25 : vector<2x128xf32>
    %cst_15 = arith.constant 1.000000e+00 : f32
    %27 = vector.broadcast %cst_15 : f32 to vector<2x128xf32>
    %28 = arith.subf %26, %27 : vector<2x128xf32>
    %29 = arith.select %23, %21, %28 : vector<2x128xi1>, vector<2x128xf32>
    %30 = vector.extract_strided_slice %29 {offsets = [0, 0], sizes = [2, 64], strides = [1, 1]} : vector<2x128xf32> to vector<2x64xf32>
    %31 = arith.truncf %30 : vector<2x64xf32> to vector<2x64xbf16>
    %c0_16 = arith.constant 0 : index
    %c0_17 = arith.constant 0 : index
    %32 = vector.load %arg6[%c0_16, %c0_17] : memref<64x128xbf16, #tpu.memory_space<vmem>>, vector<64x128xbf16>
    %cst_18 = arith.constant dense<0.000000e+00> : vector<2x128xf32>
    %33 = tpu.matmul %31, %32, %cst_18 {dimension_numbers = #tpu.dot_dimension_numbers<[1], [0], [0], [1], [0, 0, 1, 1], [], []>} : vector<2x64xbf16>, vector<64x128xbf16>, vector<2x128xf32> -> vector<2x128xf32>
    %c0_19 = arith.constant 0 : index
    %c0_20 = arith.constant 0 : index
    %34 = vector.load %arg7[%c0_19, %c0_20] : memref<1x128xf32, #tpu.memory_space<vmem>>, vector<1x128xf32>
    %35 = vector.broadcast %34 : vector<1x128xf32> to vector<2x128xf32>
    %36 = arith.addf %33, %35 : vector<2x128xf32>
    %c0_21 = arith.constant 0 : index
    %c0_22 = arith.constant 0 : index
    %37 = vector.load %arg8[%c0_21, %c0_22] : memref<2x128xf32, #tpu.memory_space<vmem>>, vector<2x128xf32>
    tpu.vector_store %arg8[%c0_21, %c0_22], %36 {strides = array<i32>} : memref<2x128xf32, #tpu.memory_space<vmem>>, vector<2x128xf32>,
    return
  }
  func.func @transform_0(%arg0: i32) -> (i32, i32) {
    %c0_i32 = arith.constant 0 : i32
    %c0_i32_0 = arith.constant 0 : i32
    return %arg0, %c0_i32 : i32, i32
  }
  func.func @transform_1(%arg0: i32) -> (i32, i32) {
    %c0_i32 = arith.constant 0 : i32
    %c0_i32_0 = arith.constant 0 : i32
    %c0_i32_1 = arith.constant 0 : i32
    return %c0_i32, %c0_i32_0 : i32, i32
  }
  func.func @transform_2(%arg0: i32) -> (i32, i32) {
    %c0_i32 = arith.constant 0 : i32
    %c0_i32_0 = arith.constant 0 : i32
    %c0_i32_1 = arith.constant 0 : i32
    return %c0_i32, %c0_i32_0 : i32, i32
  }
  func.func @transform_3(%arg0: i32) -> (i32, i32) {
    %c0_i32 = arith.constant 0 : i32
    %c0_i32_0 = arith.constant 0 : i32
    %c0_i32_1 = arith.constant 0 : i32
    return %c0_i32, %c0_i32_0 : i32, i32
  }
  func.func @transform_4(%arg0: i32) -> (i32, i32) {
    %c0_i32 = arith.constant 0 : i32
    %c0_i32_0 = arith.constant 0 : i32
    %c0_i32_1 = arith.constant 0 : i32
    return %c0_i32, %c0_i32_0 : i32, i32
  }
  func.func @transform_5(%arg0: i32) -> (i32, i32) {
    %c0_i32 = arith.constant 0 : i32
    %c0_i32_0 = arith.constant 0 : i32
    %c0_i32_1 = arith.constant 0 : i32
    return %c0_i32, %c0_i32_0 : i32, i32
  }
  func.func @transform_6(%arg0: i32) -> (i32, i32) {
    %c0_i32 = arith.constant 0 : i32
    %c0_i32_0 = arith.constant 0 : i32
    %c0_i32_1 = arith.constant 0 : i32
    return %c0_i32, %c0_i32_0 : i32, i32
  }
  func.func @transform_7(%arg0: i32) -> (i32, i32) {
    %c0_i32 = arith.constant 0 : i32
    %c0_i32_0 = arith.constant 0 : i32
    return %arg0, %c0_i32 : i32, i32
  }
}

</mosaic_0001>

<bundles_post_ra>
// kernel: tpu_custom_call.1
= control target key start
LH: loop header
LB: loop body
LE: loop exit
PB: predicated region body
PF: predicated region fallthrough
CT: control target
= control target key end

     0   :  { %12 = vsyncpa [#allocation3], 0  ;;  %s625_s0 = inlined_call_operand.hbm [shape: f32[2,32], index: 0, kind: input, shape index: {}]   ;;  %s626_s1 = inlined_call_operand.hbm [shape: bf16[32,128], index: 1, kind: input, shape index: {}]   ;;  %s627_s2 = inlined_call_operand.vmem [shape: f32[1,128], index: 2, kind: input, shape index: {}]   ;;  %s628_s3 = inlined_call_operand.hbm [shape: bf16[64,128], index: 3, kind: input, shape index: {}]   ;;  %s629_s4 = inlined_call_operand.vmem [shape: f32[1,128], index: 4, kind: input, shape index: {}]   ;;  %s630_s5 = inlined_call_operand.hbm [shape: bf16[64,128], index: 5, kind: input, shape index: {}]   ;;  %s631_s6 = inlined_call_operand.vmem [shape: f32[1,128], index: 6, kind: input, shape index: {}]   ;;  %s632_s7 = inlined_call_operand.hbm [shape: f32[2,128], index: 7, kind: output, shape index: {}]  }
   0x1   :  { %13 = vsyncpa [#allocation6], 0 }
   0x2   :  { %14 = vsyncpa [#allocation9], 0 }
   0x3   :  { %15 = vsyncpa [#allocation4], 0  ;;  %s541_s24 = smov [#allocation5]  }
   0x4   :  { %s31_s25 = sshll.u32 %s541_s24, 4  ;;  %s32_s25 = int_to_ptr.vmem [resolvable:$true] %s31_s25 }
   0x5   :  { %s441_s26 = scalar_lea.vmem %s32_s25, 256  ;;  %p446_p1 = scmp.lt.s32.totalorder %s32_s25, %s32_s25 }
   0x6   :  { %p442_p0 = scmp.ne.s32.totalorder %s32_s25, %s441_s26  ;;  %p447_p2 = scmp.lt.s32.totalorder %s441_s26, %s441_s26 }
   0x8   :  { %p448_p3 = por %p447_p2, %p446_p1 }
   0xa   :  { %p449_p4 = pnand %p448_p3, %p442_p0 }
   0xc   :  { %452 = shalt.err (!%p449_p4)
}
   0xd   :  { %s542_s27 = smov 64   ;;  %s543_s28 = smov 4  }
   0xe   :  { %37 = dma.hbm_to_vmem [thread:$0]  %s626_s1, 256, %s32_s25, [#allocation6], %s542_s27, %s542_s27, %s543_s28  }
   0xf   :  { %s544_s8 = smov [#allocation2]   ;;  %s545_s10 = smov [#allocation7]  }
  0x10   :  { %s22_s9 = sshll.u32 %s544_s8, 4  ;;  %s45_s11 = sshll.u32 %s545_s10, 4  ;;  %s23_s9 = int_to_ptr.vmem [resolvable:$true] %s22_s9  ;;  %s46_s11 = int_to_ptr.vmem [resolvable:$true] %s45_s11 }
  0x11   :  { %s461_s12 = scalar_lea.vmem %s23_s9, 32  ;;  %p466_p6 = scmp.lt.s32.totalorder %s23_s9, %s23_s9 }
  0x12   :  { %p462_p5 = scmp.ne.s32.totalorder %s23_s9, %s461_s12  ;;  %p467_p7 = scmp.lt.s32.totalorder %s461_s12, %s461_s12 }
  0x14   :  { %p468_p8 = por %p467_p7, %p466_p6 }
  0x16   :  { %p469_p9 = pnand %p468_p8, %p462_p5 }
  0x18   :  { %472 = shalt.err (!%p469_p9)
}
  0x19   :  { %25 = dma.hbm_to_vmem [thread:$0]  %s625_s0, 32, %s23_s9, [#allocation3]  }
  0x1a   :  { %s481_s15 = scalar_lea.vmem %s46_s11, 512  ;;  %p486_p11 = scmp.lt.s32.totalorder %s46_s11, %s46_s11 }
  0x1b   :  { %p482_p10 = scmp.ne.s32.totalorder %s46_s11, %s481_s15  ;;  %p487_p12 = scmp.lt.s32.totalorder %s481_s15, %s481_s15 }
  0x1d   :  { %p488_p13 = por %p487_p12, %p486_p11 }
  0x1f   :  { %p489_p0 = pnand %p488_p13, %p482_p10 }
  0x21   :  { %492 = shalt.err (!%p489_p0)
}
  0x22   :  { %51 = dma.hbm_to_vmem [thread:$0]  %s628_s3, 512, %s46_s11, [#allocation6], %s542_s27, %s542_s27, %s543_s28  }
  0x23   :  { %s546_s17 = smov [#allocation8]  }
  0x24   :  { %s59_s18 = sshll.u32 %s546_s17, 4  ;;  %s60_s18 = int_to_ptr.vmem [resolvable:$true] %s59_s18 }
  0x25   :  { %s501_s19 = scalar_lea.vmem %s60_s18, 512  ;;  %p506_p2 = scmp.lt.s32.totalorder %s60_s18, %s60_s18 }
  0x26   :  { %p502_p1 = scmp.ne.s32.totalorder %s60_s18, %s501_s19  ;;  %p507_p3 = scmp.lt.s32.totalorder %s501_s19, %s501_s19 }
  0x28   :  { %p508_p4 = por %p507_p3, %p506_p2 }
  0x2a   :  { %p509_p5 = pnand %p508_p4, %p502_p1 }
  0x2c   :  { %512 = shalt.err (!%p509_p5)
}
  0x2d   :  { %65 = dma.hbm_to_vmem [thread:$0]  %s630_s5, 512, %s60_s18, [#allocation9], %s542_s27, %s542_s27, %s543_s28  }
  0x2e   :  { %533 = dma.done.wait [#allocation3], 32  }
  0x2f   :  { %534 = vsyncadd [#allocation3], 4294967264 }
  0x30   :  { %535 = dma.done.wait [#allocation6], 768  }
  0x31   :  { %536 = vsyncadd [#allocation6], 4294966528 }
  0x32   :  { %537 = dma.done.wait [#allocation9], 512  }
  0x33   :  { %538 = vsyncadd [#allocation9], 4294966784  ;;  %v547_v0 = vmov 0.0   ;;  %vm548_vm0 = vmmov 0   ;;  %v419_v1 = vld [vmem:[#allocation5 + $0x8] sm:$0xff]   ;;  %v420_v2 = vld [vmem:[#allocation5] sm:$0xff]  }
  0x34   :  { %378 = vmatprep.subr.bf16.mxu0 %v547_v0  ;;  %382 = vmatprep.mubr.msk.bf16.mxu0 %vm548_vm0, %v547_v0  ;;  %v81_v3 = vld [vmem:[#allocation2] sm:$0x3]  ;;  %vm106_vm1 = vcmask 261120   ;;  %v421_v5 = vld [vmem:[#allocation7 + $0x18] sm:$0xff]   ;;  %v422_v6 = vld [vmem:[#allocation7 + $0x10] sm:$0xff]   ;;  %vm196_vm3 = vcmask 523264  }
  0x35   :  { %386 = vmatprep.subr.bf16.mxu1 %v547_v0  ;;  %394 = vmatprep.mubr.msk.bf16.mxu1 %vm548_vm0, %v547_v0  ;;  %v82_v4 = vpack.c.bf16 %v81_v3, %v81_v3  ;;  %v423_v7 = vld [vmem:[#allocation7 + $0x8] sm:$0xff]   ;;  %v424_v8 = vld [vmem:[#allocation7] sm:$0xff]   ;;  %v425_v21 = vld [vmem:[#allocation8 + $0x18] sm:$0xff]  }
  0x36   :  { %379 = vmatpush3.bf16.msra.mxu0 %v419_v1  ;;  %387 = vmatpush3.bf16.msra.mxu1 %v421_v5  ;;  %v347_v9 = vld [vmem:[%s627_s2] ss:$0 sm:$0xff]  ;;  %v426_v22 = vld [vmem:[#allocation8 + $0x10] sm:$0xff]   ;;  %v428_v24 = vld [vmem:[#allocation8] sm:$0xff]  }
  0x37   :  { %380 = vmatprep.subr.bf16.mxu0 %v547_v0  ;;  %388 = vmatprep.subr.bf16.mxu1 %v547_v0  ;;  %v427_v23 = vld [vmem:[#allocation8 + $0x8] sm:$0xff]  }
  0x38   :  { %v352_v25 = vld [vmem:[%s629_s4] ss:$0 sm:$0xff]  ;;  %s549_s4 = smov [#allocation10]  }
  0x39   :  { %v359_v37 = vld [vmem:[%s631_s6] ss:$0 sm:$0xff]  ;;  %s336_s24 = sshll.u32 %s549_s4, 4  ;;  %s337_s24 = int_to_ptr.vmem [resolvable:$true] %s336_s24 }
  0x3a   :  { %381 = vmatpush3.bf16.msra.mxu0 %v420_v2  ;;  %389 = vmatpush3.bf16.msra.mxu1 %v422_v6  ;;  %s513_s25 = scalar_lea.vmem %s337_s24, 32  ;;  %p518_p7 = scmp.lt.s32.totalorder %s337_s24, %s337_s24 }
  0x3b   :  { %398 = vmatprep.subr.bf16.mxu0 %v547_v0  ;;  %390 = vmatprep.subr.bf16.mxu1 %v547_v0  ;;  %p514_p6 = scmp.ne.s32.totalorder %s337_s24, %s513_s25  ;;  %p519_p8 = scmp.lt.s32.totalorder %s513_s25, %s513_s25 }
  0x3d   :  { %383 = vmatmul.mubr.msk.bf16.vlgmr.msra.gmra.mxu0 %vm106_vm1, %v82_v4  ;;  %p520_p9 = por %p519_p8, %p518_p7 }
  0x3e   :  { %406 = vmatprep.mubr.msk.bf16.mxu0 %vm548_vm0, %v547_v0  ;;  %391 = vmatpush3.bf16.msra.mxu1 %v423_v7 }
  0x3f   :  { %392 = vmatprep.subr.bf16.mxu1 %v547_v0  ;;  %399 = vmatpush3.bf16.msra.mxu0 %v425_v21  ;;  %p521_p10 = pnand %p520_p9, %p514_p6 }
  0x40   :  { %400 = vmatprep.subr.bf16.mxu0 %v547_v0 }
  0x42   :  { %393 = vmatpush3.bf16.msra.mxu1 %v424_v8 }
  0x43   :  { %401 = vmatpush3.bf16.msra.mxu0 %v426_v22 }
  0x44   :  { %402 = vmatprep.subr.bf16.mxu0 %v547_v0 }
  0x47   :  { %403 = vmatpush3.bf16.msra.mxu0 %v427_v23 }
  0x48   :  { %404 = vmatprep.subr.bf16.mxu0 %v547_v0 }
  0x4b   :  { %405 = vmatpush3.bf16.msra.mxu0 %v428_v24 }
  0xfd   :  { %v144_v10 = vpop.f32.mrf.mxu0 }
  0xfe   :  { %v145_v11 = vadd.f32 %v347_v9, %v144_v10 }
  0xff   :  { %v384_v12 = vpop.f32.mrf.mxu0 }
 0x100   :  { %v151_v13 = vmin.f32 %v145_v11, 0.0  ;;  %vm150_vm2 = vcmp.gt.f32.partialorder %v145_v11, 0.0 }
 0x101   :  { %v147_v14 = vpop.f32.mrf.mxu0 }
 0x102   :  { %v152_v15 = vmul.f32 1.442695, %v151_v13 }
 0x103   :  { %v385_v16 = vpop.f32.mrf.mxu0 }
 0x104   :  { %429 = vpow2.f32 %v152_v15 }
 0x111   :  { %v430_v17 = vpop.eup %429 }
 0x112   :  { %v351_v18 = vadd.f32 -1.0, %v430_v17 }
 0x114   :  { %v155_v19 = vsel %vm150_vm2, %v145_v11, %v351_v18 }
 0x115   :  { %v156_v20 = vpack.c.bf16 %v155_v19, %v155_v19 }
 0x117   :  { %395 = vmatmul.mubr.msk.bf16.vlgmr.msra.gmra.mxu1 %vm196_vm3, %v156_v20 }
 0x1d7   :  { %v234_v26 = vpop.f32.mrf.mxu1 }
 0x1d8   :  { %v235_v27 = vadd.f32 %v352_v25, %v234_v26 }
 0x1d9   :  { %v396_v28 = vpop.f32.mrf.mxu1 }
 0x1da   :  { %v241_v29 = vmin.f32 %v235_v27, 0.0  ;;  %vm240_vm4 = vcmp.gt.f32.partialorder %v235_v27, 0.0 }
 0x1db   :  { %v237_v30 = vpop.f32.mrf.mxu1 }
 0x1dc   :  { %v242_v31 = vmul.f32 1.442695, %v241_v29 }
 0x1dd   :  { %v397_v32 = vpop.f32.mrf.mxu1 }
 0x1de   :  { %431 = vpow2.f32 %v242_v31 }
 0x1eb   :  { %v432_v33 = vpop.eup %431 }
 0x1ec   :  { %v358_v34 = vadd.f32 -1.0, %v432_v33 }
 0x1ee   :  { %v245_v35 = vsel %vm240_vm4, %v235_v27, %v358_v34 }
 0x1ef   :  { %v246_v36 = vpack.c.bf16 %v245_v35, %v245_v35 }
 0x1f1   :  { %407 = vmatmul.mubr.msk.bf16.vlgmr.msra.gmra.mxu0 %vm196_vm3, %v246_v36 }
 0x2b1   :  { %v323_v38 = vpop.f32.mrf.mxu0 }
 0x2b2   :  { %v324_v39 = vadd.f32 %v359_v37, %v323_v38 }
 0x2b3   :  { %v408_v40 = vpop.f32.mrf.mxu0 }
 0x2b4   :  { %329 = vst [vmem:[#allocation10] sm:$0x3] %v324_v39 }
 0x2b5   :  { %v326_v41 = vpop.f32.mrf.mxu0 }
 0x2b6   :  { %524 = shalt.err (!%p521_p10)
}
 0x2b7   :  { %339 = dma.vmem_to_hbm [thread:$0]  %s337_s24, 32, %s632_s7, [#allocation4]   ;;  %v409_v42 = vpop.f32.mrf.mxu0 }
 0x2b8   :  { %539 = dma.done.wait [#allocation4], 32  }
 0x2b9   :  { %540 = vsyncadd [#allocation4], 4294967264 }
 0x2ba   :  { %343 = vsyncpa [#allocation3], 1 }
 0x2bb   :  { %344 = vsyncpa [#allocation6], 1 }
 0x2bc   :  { %345 = vsyncpa [#allocation9], 1 }
 0x2bd   :  { %346 = vsyncpa [#allocation4], 1 }

</bundles_post_ra>
